<compile_context>
chip_gen: v6e
topology: v6e:2x2x1
jax: 0.10.0
libtpu: 0.0.40
codegen_flags: <defaults>
</compile_context>

<pallas_src>
import functools
import math

import jax
import jax.numpy as jnp
from jax import lax
from jax.experimental import pallas as pl
from jax.experimental.pallas import tpu as pltpu

BN_EPS = 1e-5


def _fused_resnet_block_kernel(*refs, n_batch, seq_len, stride_s, pad_left,
                               w_out, layer_dims, has_residual):
    """refs = x_gapped, (wf, gamma, beta) x n_layers, [(rwf, rg, rb)],
    out, act_scratch, col_scratch."""
    x_ref = refs[0]
    pos = 1
    layer_refs = []
    for _ in range(len(layer_dims)):
        layer_refs.append((refs[pos], refs[pos + 1], refs[pos + 2]))
        pos += 3
    res_refs = None
    if has_residual:
        res_refs = (refs[pos], refs[pos + 1], refs[pos + 2])
        pos += 3
    o_ref = refs[pos]
    act_ref = refs[pos + 1]        # (C_max, M)      gapped activation buffer
    col_ref = refs[pos + 2]        # (rows_max, W)   im2col buffer

    m_total = act_ref.shape[1]
    act_rows = act_ref.shape[0]
    inv_cnt = 1.0 / float(n_batch * seq_len)

    # Hoisted once: marks the n_batch*seq_len valid output columns.  The
    # inter-sample zero-gap columns are excluded from BN statistics and are
    # re-zeroed before feeding the next layer.
    col_idx = lax.broadcasted_iota(jnp.int32, (1, w_out), 1)
    valid = (col_idx % stride_s) < seq_len              # (1, w_out) bool

    # Zero only the pad margins of the activation scratch, once.  The interior
    # [pad_left, pad_left + w_out) is fully rewritten every layer, so no
    # per-layer zero-fill is needed.
    if pad_left > 0:
        act_ref[:, 0:pad_left] = jnp.zeros((act_rows, pad_left), act_ref.dtype)
    tail = m_total - (pad_left + w_out)
    if tail > 0:
        act_ref[:, pad_left + w_out:m_total] = jnp.zeros(
            (act_rows, tail), act_ref.dtype)

    def conv_bn(in_ref, cin, wf_ref, g_ref, b_ref, ksize, relu, store_out):
        """Conv1d 'same' (stride 1) + train-mode BatchNorm1d [+ ReLU].

        in_ref holds gapped activations: sample n occupies columns
        pad_left + n*stride_s + [0, seq_len), everything else is zero, so each
        conv tap is one contiguous full-width lane slice.  Returns the
        (cout, w_out) f32 result; if store_out, also writes the gap-masked
        result into act_ref rows [0, cout) for the next layer.
        """
        wf = wf_ref[...]                                 # (cout, ksize*cin)
        pad_l = (ksize - 1) // 2
        if ksize > 1:
            rows = ksize * cin
            for t in range(ksize):                       # static, unrolled
                d = t - pad_l
                blk = in_ref[0:cin, pad_left + d:pad_left + d + w_out]
                col_ref[t * cin:(t + 1) * cin, :] = blk.astype(col_ref.dtype)
            rhs = col_ref[0:rows, :]
        else:                                            # 1x1 shortcut conv
            rhs = in_ref[0:cin, pad_left:pad_left + w_out].astype(wf.dtype)

        # One wide MXU matmul per layer, f32 accumulation.
        acc = jnp.dot(wf, rhs, preferred_element_type=jnp.float32)

        # Train-mode BatchNorm over the n_batch*seq_len valid positions
        # (two-pass centered variance, biased estimator -> matches
        # nn.BatchNorm1d normalization in training mode).
        mean = jnp.where(valid, acc, 0.0).sum(axis=1, keepdims=True) * inv_cnt
        cen = acc - mean
        cen_v = jnp.where(valid, cen, 0.0)
        var = (cen_v * cen_v).sum(axis=1, keepdims=True) * inv_cnt
        scale = g_ref[...] * lax.rsqrt(var + BN_EPS)
        y = cen * scale + b_ref[...]
        if relu:
            y = jnp.maximum(y, 0.0)
        if store_out:
            cout = wf.shape[0]
            act_ref[0:cout, pad_left:pad_left + w_out] = (
                jnp.where(valid, y, 0.0).astype(act_ref.dtype))
        return y

    h = None
    n_layers = len(layer_dims)
    for li, (wf_ref, g_ref, b_ref) in enumerate(layer_refs):
        cin, cout, ksize = layer_dims[li]
        in_ref = x_ref if li == 0 else act_ref
        h = conv_bn(in_ref, cin, wf_ref, g_ref, b_ref, ksize, relu=True,
                    store_out=(li != n_layers - 1))

    if has_residual:
        rwf_ref, rg_ref, rb_ref = res_refs
        cin0 = layer_dims[0][0]
        # Shortcut 1x1 conv + BN, computed last by re-reading the
        # VMEM-resident input ref.
        r = conv_bn(x_ref, cin0, rwf_ref, rg_ref, rb_ref, 1, relu=False,
                    store_out=False)
        h = h + r

    o_ref[...] = h.astype(o_ref.dtype)


def _flatten_conv_weight(W, dtype):
    """(C_out, C_in, K) torch layout -> (C_out, K*C_in), row order (t, ci)."""
    cout, cin, k = W.shape
    return jnp.transpose(W, (0, 2, 1)).reshape(cout, k * cin).astype(dtype)


def resnet_block(x_ncl, params, *, use_bf16_matmul=True):
    """ResNetBlock forward.  x_ncl: (N, C_in, L) -> (N, C_out, L).

    params = {'layers': [(W (C_out,C_in,K), gamma (C_out,), beta (C_out,)) x3],
              'residual': (W (C_out,C_in,1), gamma, beta) or None}
    BatchNorm uses per-call batch statistics (train-mode), matching a freshly
    constructed PyTorch module run in train() mode.
    """
    N, Cin, L = x_ncl.shape
    layers = params['layers']
    residual = params.get('residual')
    has_residual = residual is not None
    mxu_dtype = jnp.bfloat16 if use_bf16_matmul else jnp.float32

    ksizes = [int(W.shape[2]) for (W, _, _) in layers]
    if has_residual:
        ksizes.append(1)
    pad_left = max((k - 1) // 2 for k in ksizes)     # TF-"same": left (K-1)//2
    pad_right = max(k // 2 for k in ksizes)          #            right  K//2
    gap = max(pad_left, pad_right)                   # shared zero gap
    stride_s = L + gap
    w_out = (N - 1) * stride_s + L                   # gapped lane width (out)
    m_total = pad_left + N * stride_s                # gapped lane width (in)

    # Host-side layout plumbing: stack samples on the lane axis with zero
    # separators:  (C, [pad_left | s0 | gap | s1 | gap | ...]).
    x_flat = jnp.pad(jnp.transpose(x_ncl, (1, 0, 2)).astype(jnp.float32),
                     ((0, 0), (0, 0), (0, gap))).reshape(Cin, N * stride_s)
    x_gapped = jnp.pad(x_flat, ((0, 0), (pad_left, 0)))

    inputs = [x_gapped]
    layer_dims = []
    rows_max = 8
    c_act = 8
    for (W, g, b) in layers:
        cout, cin, k = W.shape
        layer_dims.append((int(cin), int(cout), int(k)))
        rows_max = max(rows_max, int(k) * int(cin))
        c_act = max(c_act, int(cout))
        inputs += [_flatten_conv_weight(W, mxu_dtype),
                   g.reshape(cout, 1).astype(jnp.float32),
                   b.reshape(cout, 1).astype(jnp.float32)]
    if has_residual:
        RW, rg, rb = residual
        cr = RW.shape[0]
        inputs += [_flatten_conv_weight(RW, mxu_dtype),
                   rg.reshape(cr, 1).astype(jnp.float32),
                   rb.reshape(cr, 1).astype(jnp.float32)]
    cout_final = layer_dims[-1][1]

    kernel = functools.partial(
        _fused_resnet_block_kernel,
        n_batch=N, seq_len=L, stride_s=stride_s, pad_left=pad_left,
        w_out=w_out, layer_dims=tuple(layer_dims), has_residual=has_residual)

    # Conservative explicit VMEM budget (inputs + output + scratch, x4).
    itemsize = jnp.dtype(mxu_dtype).itemsize
    est = (sum(int(a.size) * a.dtype.itemsize for a in inputs)
           + cout_final * w_out * 4
           + c_act * m_total * itemsize + rows_max * w_out * itemsize)
    vmem_limit = int(min(max(4 * est, 16 * 1024 * 1024), 64 * 1024 * 1024))

    vmem = pl.BlockSpec(memory_space=pltpu.MemorySpace.VMEM)
    out_gapped = pl.pallas_call(
        kernel,
        out_shape=jax.ShapeDtypeStruct((cout_final, w_out), x_ncl.dtype),
        in_specs=[vmem] * len(inputs),
        out_specs=vmem,
        scratch_shapes=[pltpu.VMEM((c_act, m_total), mxu_dtype),
                        pltpu.VMEM((rows_max, w_out), mxu_dtype)],
        compiler_params=pltpu.CompilerParams(vmem_limit_bytes=vmem_limit),
    )(*inputs)

    # Drop the gap columns and restore the (N, C_out, L) layout.
    out = jnp.pad(out_gapped, ((0, 0), (0, N * stride_s - w_out)))
    out = out.reshape(cout_final, N, stride_s)[:, :, :L]
    return jnp.transpose(out, (1, 0, 2))


def _reference_resnet_block(x, params):
    """Pure-JAX reference (same semantics) for a correctness check."""
    def conv_bn(h, W, g, b, relu):
        k = W.shape[2]
        hp = jnp.pad(h, ((0, 0), (0, 0), ((k - 1) // 2, k // 2)))
        y = lax.conv_general_dilated(
            hp, W, window_strides=(1,), padding='VALID',
            dimension_numbers=('NCH', 'OIH', 'NCH'),
            precision=lax.Precision.HIGHEST)
        mean = y.mean(axis=(0, 2), keepdims=True)
        var = ((y - mean) ** 2).mean(axis=(0, 2), keepdims=True)
        y = (y - mean) * lax.rsqrt(var + BN_EPS) * g.reshape(1, -1, 1) + b.reshape(1, -1, 1)
        return jnp.maximum(y, 0.0) if relu else y

    h = x
    for (W, g, b) in params['layers']:
        h = conv_bn(h, W, g, b, relu=True)
    if params.get('residual') is not None:
        RW, rg, rb = params['residual']
        h = h + conv_bn(x, RW, rg, rb, relu=False)
    return h


if __name__ == "__main__":
    key = jax.random.PRNGKey(0)
    N, Cin, Cout, L = 2, 4, 8, 16
    kernel_sizes = [8, 5, 3]
    channels = [Cin, Cout, Cout, Cout]

    keys = jax.random.split(key, 6)
    layers = []
    for i, ks in enumerate(kernel_sizes):
        cin, cout = channels[i], channels[i + 1]
        W = jax.random.normal(keys[i], (cout, cin, ks), jnp.float32) / math.sqrt(cin * ks)
        g = 1.0 + 0.1 * jnp.arange(cout, dtype=jnp.float32)
        b = 0.05 * jnp.arange(cout, dtype=jnp.float32)
        layers.append((W, g, b))

    residual = None
    if Cin != Cout:            # match_channels branch of the PyTorch module
        RW = jax.random.normal(keys[3], (Cout, Cin, 1), jnp.float32) / math.sqrt(Cin)
        rg = 1.0 - 0.05 * jnp.arange(Cout, dtype=jnp.float32)
        rb = 0.02 * jnp.arange(Cout, dtype=jnp.float32)
        residual = (RW, rg, rb)

    params = {'layers': layers, 'residual': residual}
    x = jax.random.normal(keys[4], (N, Cin, L), jnp.float32)

    ref = _reference_resnet_block(x, params)

    # Exact-f32 path: tight check against the pure-JAX reference.
    out_f32 = resnet_block(x, params, use_bf16_matmul=False)
    jax.block_until_ready(out_f32)
    assert out_f32.shape == (N, Cout, L) and out_f32.dtype == jnp.float32
    err = float(jnp.max(jnp.abs(out_f32 - ref)))
    assert jnp.allclose(out_f32, ref, rtol=1e-3, atol=1e-3), (
        "f32 max abs err = %f" % err)

    # Default bf16-MXU fast path (f32 accumulation): looser sanity check.
    out_bf16 = resnet_block(x, params)
    jax.block_until_ready(out_bf16)
    err_bf = float(jnp.max(jnp.abs(out_bf16 - ref)))
    assert jnp.allclose(out_bf16, ref, rtol=1e-1, atol=1e-1), (
        "bf16 max abs err = %f" % err_bf)

    print("KERNEL_OK")
</pallas_src>

<mosaic_0001>
module attributes {stable_mosaic.version = 11 : i64} {
  func.func @_fused_resnet_block_kernel(%arg0: memref<4x43xf32, #tpu.memory_space<vmem>>, %arg1: memref<8x32xf32, #tpu.memory_space<vmem>>, %arg2: memref<8x1xf32, #tpu.memory_space<vmem>>, %arg3: memref<8x1xf32, #tpu.memory_space<vmem>>, %arg4: memref<8x40xf32, #tpu.memory_space<vmem>>, %arg5: memref<8x1xf32, #tpu.memory_space<vmem>>, %arg6: memref<8x1xf32, #tpu.memory_space<vmem>>, %arg7: memref<8x24xf32, #tpu.memory_space<vmem>>, %arg8: memref<8x1xf32, #tpu.memory_space<vmem>>, %arg9: memref<8x1xf32, #tpu.memory_space<vmem>>, %arg10: memref<8x4xf32, #tpu.memory_space<vmem>>, %arg11: memref<8x1xf32, #tpu.memory_space<vmem>>, %arg12: memref<8x1xf32, #tpu.memory_space<vmem>>, %arg13: memref<8x36xf32, #tpu.memory_space<vmem>>, %arg14: memref<8x43xf32, #tpu.memory_space<vmem>>, %arg15: memref<40x36xf32, #tpu.memory_space<vmem>>) attributes {dimension_semantics = [], scalar_prefetch = 0 : i64, scratch_operands = 2 : i64, tpu.core_type = #tpu.core_type<tc>} {
    %0 = tpu.iota {dimensions = array<i32: 1>} : vector<1x36xi32>
    %c20_i32 = arith.constant 20 : i32
    %c0_i32 = arith.constant 0 : i32
    %1 = arith.cmpi eq, %c20_i32, %c0_i32 : i32
    %c1_i32 = arith.constant 1 : i32
    %2 = arith.select %1, %c1_i32, %c20_i32 : i32
    %3 = vector.broadcast %2 : i32 to vector<1x36xi32>
    %4 = arith.remsi %0, %3 : vector<1x36xi32>
    %c0_i32_0 = arith.constant 0 : i32
    %5 = vector.broadcast %c0_i32_0 : i32 to vector<1x36xi32>
    %6 = arith.cmpi ne, %4, %5 : vector<1x36xi32>
    %c0_i32_1 = arith.constant 0 : i32
    %7 = vector.broadcast %c0_i32_1 : i32 to vector<1x36xi32>
    %8 = arith.cmpi slt, %4, %7 : vector<1x36xi32>
    %c0_i32_2 = arith.constant 0 : i32
    %9 = arith.cmpi slt, %2, %c0_i32_2 : i32
    %10 = vector.broadcast %9 : i1 to vector<1x36xi1>
    %11 = vector.broadcast %10 : vector<1x36xi1> to vector<1x36xi1>
    %12 = arith.xori %8, %11 : vector<1x36xi1>
    %13 = arith.andi %12, %6 : vector<1x36xi1>
    %14 = vector.broadcast %2 : i32 to vector<1x36xi32>
    %15 = arith.addi %4, %14 : vector<1x36xi32>
    %16 = arith.select %13, %15, %4 : vector<1x36xi1>, vector<1x36xi32>
    %c16_i32 = arith.constant 16 : i32
    %17 = vector.broadcast %c16_i32 : i32 to vector<1x36xi32>
    %18 = arith.cmpi slt, %16, %17 : vector<1x36xi32>
    %cst = arith.constant 0.000000e+00 : f32
    %19 = vector.broadcast %cst : f32 to vector<8x3xf32>
    %c0 = arith.constant 0 : index
    %c0_3 = arith.constant 0 : index
    %20 = vector.load %arg14[%c0, %c0_3] : memref<8x43xf32, #tpu.memory_space<vmem>>, vector<8x3xf32>
    tpu.vector_store %arg14[%c0, %c0_3], %19 {strides = array<i32>} : memref<8x43xf32, #tpu.memory_space<vmem>>, vector<8x3xf32>,
    %cst_4 = arith.constant 0.000000e+00 : f32
    %21 = vector.broadcast %cst_4 : f32 to vector<8x4xf32>
    %c0_5 = arith.constant 0 : index
    %c39 = arith.constant 39 : index
    %22 = vector.load %arg14[%c0_5, %c39] : memref<8x43xf32, #tpu.memory_space<vmem>>, vector<8x4xf32>
    tpu.vector_store %arg14[%c0_5, %c39], %21 {strides = array<i32>} : memref<8x43xf32, #tpu.memory_space<vmem>>, vector<8x4xf32>,
    %c0_6 = arith.constant 0 : index
    %c0_7 = arith.constant 0 : index
    %23 = vector.load %arg1[%c0_6, %c0_7] : memref<8x32xf32, #tpu.memory_space<vmem>>, vector<8x32xf32>
    %c0_8 = arith.constant 0 : index
    %c0_9 = arith.constant 0 : index
    %24 = vector.load %arg0[%c0_8, %c0_9] : memref<4x43xf32, #tpu.memory_space<vmem>>, vector<4x36xf32>
    %c0_10 = arith.constant 0 : index
    %c0_11 = arith.constant 0 : index
    %25 = vector.load %arg15[%c0_10, %c0_11] : memref<40x36xf32, #tpu.memory_space<vmem>>, vector<4x36xf32>
    tpu.vector_store %arg15[%c0_10, %c0_11], %24 {strides = array<i32>} : memref<40x36xf32, #tpu.memory_space<vmem>>, vector<4x36xf32>,
    %c0_12 = arith.constant 0 : index
    %c1 = arith.constant 1 : index
    %26 = vector.load %arg0[%c0_12, %c1] : memref<4x43xf32, #tpu.memory_space<vmem>>, vector<4x36xf32>
    %c4 = arith.constant 4 : index
    %c0_13 = arith.constant 0 : index
    %27 = vector.load %arg15[%c4, %c0_13] : memref<40x36xf32, #tpu.memory_space<vmem>>, vector<4x36xf32>
    tpu.vector_store %arg15[%c4, %c0_13], %26 {strides = array<i32>} : memref<40x36xf32, #tpu.memory_space<vmem>>, vector<4x36xf32>,
    %c0_14 = arith.constant 0 : index
    %c2 = arith.constant 2 : index
    %28 = vector.load %arg0[%c0_14, %c2] : memref<4x43xf32, #tpu.memory_space<vmem>>, vector<4x36xf32>
    %c8 = arith.constant 8 : index
    %c0_15 = arith.constant 0 : index
    %29 = vector.load %arg15[%c8, %c0_15] : memref<40x36xf32, #tpu.memory_space<vmem>>, vector<4x36xf32>
    tpu.vector_store %arg15[%c8, %c0_15], %28 {strides = array<i32>} : memref<40x36xf32, #tpu.memory_space<vmem>>, vector<4x36xf32>,
    %c0_16 = arith.constant 0 : index
    %c3 = arith.constant 3 : index
    %30 = vector.load %arg0[%c0_16, %c3] : memref<4x43xf32, #tpu.memory_space<vmem>>, vector<4x36xf32>
    %c12 = arith.constant 12 : index
    %c0_17 = arith.constant 0 : index
    %31 = vector.load %arg15[%c12, %c0_17] : memref<40x36xf32, #tpu.memory_space<vmem>>, vector<4x36xf32>
    tpu.vector_store %arg15[%c12, %c0_17], %30 {strides = array<i32>} : memref<40x36xf32, #tpu.memory_space<vmem>>, vector<4x36xf32>,
    %c0_18 = arith.constant 0 : index
    %c4_19 = arith.constant 4 : index
    %32 = vector.load %arg0[%c0_18, %c4_19] : memref<4x43xf32, #tpu.memory_space<vmem>>, vector<4x36xf32>
    %c16 = arith.constant 16 : index
    %c0_20 = arith.constant 0 : index
    %33 = vector.load %arg15[%c16, %c0_20] : memref<40x36xf32, #tpu.memory_space<vmem>>, vector<4x36xf32>
    tpu.vector_store %arg15[%c16, %c0_20], %32 {strides = array<i32>} : memref<40x36xf32, #tpu.memory_space<vmem>>, vector<4x36xf32>,
    %c0_21 = arith.constant 0 : index
    %c5 = arith.constant 5 : index
    %34 = vector.load %arg0[%c0_21, %c5] : memref<4x43xf32, #tpu.memory_space<vmem>>, vector<4x36xf32>
    %c20 = arith.constant 20 : index
    %c0_22 = arith.constant 0 : index
    %35 = vector.load %arg15[%c20, %c0_22] : memref<40x36xf32, #tpu.memory_space<vmem>>, vector<4x36xf32>
    tpu.vector_store %arg15[%c20, %c0_22], %34 {strides = array<i32>} : memref<40x36xf32, #tpu.memory_space<vmem>>, vector<4x36xf32>,
    %c0_23 = arith.constant 0 : index
    %c6 = arith.constant 6 : index
    %36 = vector.load %arg0[%c0_23, %c6] : memref<4x43xf32, #tpu.memory_space<vmem>>, vector<4x36xf32>
    %c24 = arith.constant 24 : index
    %c0_24 = arith.constant 0 : index
    %37 = vector.load %arg15[%c24, %c0_24] : memref<40x36xf32, #tpu.memory_space<vmem>>, vector<4x36xf32>
    tpu.vector_store %arg15[%c24, %c0_24], %36 {strides = array<i32>} : memref<40x36xf32, #tpu.memory_space<vmem>>, vector<4x36xf32>,
    %c0_25 = arith.constant 0 : index
    %c7 = arith.constant 7 : index
    %38 = vector.load %arg0[%c0_25, %c7] : memref<4x43xf32, #tpu.memory_space<vmem>>, vector<4x36xf32>
    %c28 = arith.constant 28 : index
    %c0_26 = arith.constant 0 : index
    %39 = vector.load %arg15[%c28, %c0_26] : memref<40x36xf32, #tpu.memory_space<vmem>>, vector<4x36xf32>
    tpu.vector_store %arg15[%c28, %c0_26], %38 {strides = array<i32>} : memref<40x36xf32, #tpu.memory_space<vmem>>, vector<4x36xf32>,
    %c0_27 = arith.constant 0 : index
    %c0_28 = arith.constant 0 : index
    %40 = vector.load %arg15[%c0_27, %c0_28] : memref<40x36xf32, #tpu.memory_space<vmem>>, vector<32x36xf32>
    %cst_29 = arith.constant dense<0.000000e+00> : vector<8x36xf32>
    %41 = tpu.matmul %23, %40, %cst_29 {dimension_numbers = #tpu.dot_dimension_numbers<[1], [0], [0], [1], [0, 0, 1, 1], [], []>} : vector<8x32xf32>, vector<32x36xf32>, vector<8x36xf32> -> vector<8x36xf32>
    %cst_30 = arith.constant 0.000000e+00 : f32
    %42 = vector.shape_cast %18 : vector<1x36xi1> to vector<1x36xi1>
    %43 = vector.broadcast %42 : vector<1x36xi1> to vector<8x36xi1>
    %44 = vector.broadcast %cst_30 : f32 to vector<8x36xf32>
    %45 = arith.select %43, %41, %44 : vector<8x36xi1>, vector<8x36xf32>
    %cst_31 = arith.constant dense<0.000000e+00> : vector<8xf32>
    %46 = vector.multi_reduction <add>, %45, %cst_31 [1] : vector<8x36xf32> to vector<8xf32>
    %47 = vector.shape_cast %46 : vector<8xf32> to vector<8x1xf32>
    %cst_32 = arith.constant 3.125000e-02 : f32
    %48 = vector.broadcast %cst_32 : f32 to vector<8x1xf32>
    %49 = arith.mulf %47, %48 : vector<8x1xf32>
    %50 = vector.broadcast %49 : vector<8x1xf32> to vector<8x36xf32>
    %51 = arith.subf %41, %50 : vector<8x36xf32>
    %cst_33 = arith.constant 0.000000e+00 : f32
    %52 = vector.shape_cast %18 : vector<1x36xi1> to vector<1x36xi1>
    %53 = vector.broadcast %52 : vector<1x36xi1> to vector<8x36xi1>
    %54 = vector.broadcast %cst_33 : f32 to vector<8x36xf32>
    %55 = arith.select %53, %51, %54 : vector<8x36xi1>, vector<8x36xf32>
    %56 = arith.mulf %55, %55 : vector<8x36xf32>
    %cst_34 = arith.constant dense<0.000000e+00> : vector<8xf32>
    %57 = vector.multi_reduction <add>, %56, %cst_34 [1] : vector<8x36xf32> to vector<8xf32>
    %58 = vector.shape_cast %57 : vector<8xf32> to vector<8x1xf32>
    %cst_35 = arith.constant 3.125000e-02 : f32
    %59 = vector.broadcast %cst_35 : f32 to vector<8x1xf32>
    %60 = arith.mulf %58, %59 : vector<8x1xf32>
    %c0_36 = arith.constant 0 : index
    %c0_37 = arith.constant 0 : index
    %61 = vector.load %arg2[%c0_36, %c0_37] : memref<8x1xf32, #tpu.memory_space<vmem>>, vector<8x1xf32>
    %cst_38 = arith.constant 9.99999974E-6 : f32
    %62 = vector.broadcast %cst_38 : f32 to vector<8x1xf32>
    %63 = arith.addf %60, %62 : vector<8x1xf32>
    %64 = math.rsqrt %63 : vector<8x1xf32>
    %65 = arith.mulf %61, %64 : vector<8x1xf32>
    %66 = vector.broadcast %65 : vector<8x1xf32> to vector<8x36xf32>
    %67 = arith.mulf %51, %66 : vector<8x36xf32>
    %c0_39 = arith.constant 0 : index
    %c0_40 = arith.constant 0 : index
    %68 = vector.load %arg3[%c0_39, %c0_40] : memref<8x1xf32, #tpu.memory_space<vmem>>, vector<8x1xf32>
    %69 = vector.broadcast %68 : vector<8x1xf32> to vector<8x36xf32>
    %70 = arith.addf %67, %69 : vector<8x36xf32>
    %cst_41 = arith.constant 0.000000e+00 : f32
    %71 = vector.broadcast %cst_41 : f32 to vector<8x36xf32>
    %72 = arith.maximumf %70, %71 : vector<8x36xf32>
    %cst_42 = arith.constant 0.000000e+00 : f32
    %73 = vector.shape_cast %18 : vector<1x36xi1> to vector<1x36xi1>
    %74 = vector.broadcast %73 : vector<1x36xi1> to vector<8x36xi1>
    %75 = vector.broadcast %cst_42 : f32 to vector<8x36xf32>
    %76 = arith.select %74, %72, %75 : vector<8x36xi1>, vector<8x36xf32>
    %c0_43 = arith.constant 0 : index
    %c3_44 = arith.constant 3 : index
    %77 = vector.load %arg14[%c0_43, %c3_44] : memref<8x43xf32, #tpu.memory_space<vmem>>, vector<8x36xf32>
    tpu.vector_store %arg14[%c0_43, %c3_44], %76 {strides = array<i32>} : memref<8x43xf32, #tpu.memory_space<vmem>>, vector<8x36xf32>,
    %c0_45 = arith.constant 0 : index
    %c0_46 = arith.constant 0 : index
    %78 = vector.load %arg4[%c0_45, %c0_46] : memref<8x40xf32, #tpu.memory_space<vmem>>, vector<8x40xf32>
    %c0_47 = arith.constant 0 : index
    %c1_48 = arith.constant 1 : index
    %79 = vector.load %arg14[%c0_47, %c1_48] : memref<8x43xf32, #tpu.memory_space<vmem>>, vector<8x36xf32>
    %c0_49 = arith.constant 0 : index
    %c0_50 = arith.constant 0 : index
    %80 = vector.load %arg15[%c0_49, %c0_50] : memref<40x36xf32, #tpu.memory_space<vmem>>, vector<8x36xf32>
    tpu.vector_store %arg15[%c0_49, %c0_50], %79 {strides = array<i32>} : memref<40x36xf32, #tpu.memory_space<vmem>>, vector<8x36xf32>,
    %c0_51 = arith.constant 0 : index
    %c2_52 = arith.constant 2 : index
    %81 = vector.load %arg14[%c0_51, %c2_52] : memref<8x43xf32, #tpu.memory_space<vmem>>, vector<8x36xf32>
    %c8_53 = arith.constant 8 : index
    %c0_54 = arith.constant 0 : index
    %82 = vector.load %arg15[%c8_53, %c0_54] : memref<40x36xf32, #tpu.memory_space<vmem>>, vector<8x36xf32>
    tpu.vector_store %arg15[%c8_53, %c0_54], %81 {strides = array<i32>} : memref<40x36xf32, #tpu.memory_space<vmem>>, vector<8x36xf32>,
    %c0_55 = arith.constant 0 : index
    %c3_56 = arith.constant 3 : index
    %83 = vector.load %arg14[%c0_55, %c3_56] : memref<8x43xf32, #tpu.memory_space<vmem>>, vector<8x36xf32>
    %c16_57 = arith.constant 16 : index
    %c0_58 = arith.constant 0 : index
    %84 = vector.load %arg15[%c16_57, %c0_58] : memref<40x36xf32, #tpu.memory_space<vmem>>, vector<8x36xf32>
    tpu.vector_store %arg15[%c16_57, %c0_58], %83 {strides = array<i32>} : memref<40x36xf32, #tpu.memory_space<vmem>>, vector<8x36xf32>,
    %c0_59 = arith.constant 0 : index
    %c4_60 = arith.constant 4 : index
    %85 = vector.load %arg14[%c0_59, %c4_60] : memref<8x43xf32, #tpu.memory_space<vmem>>, vector<8x36xf32>
    %c24_61 = arith.constant 24 : index
    %c0_62 = arith.constant 0 : index
    %86 = vector.load %arg15[%c24_61, %c0_62] : memref<40x36xf32, #tpu.memory_space<vmem>>, vector<8x36xf32>
    tpu.vector_store %arg15[%c24_61, %c0_62], %85 {strides = array<i32>} : memref<40x36xf32, #tpu.memory_space<vmem>>, vector<8x36xf32>,
    %c0_63 = arith.constant 0 : index
    %c5_64 = arith.constant 5 : index
    %87 = vector.load %arg14[%c0_63, %c5_64] : memref<8x43xf32, #tpu.memory_space<vmem>>, vector<8x36xf32>
    %c32 = arith.constant 32 : index
    %c0_65 = arith.constant 0 : index
    %88 = vector.load %arg15[%c32, %c0_65] : memref<40x36xf32, #tpu.memory_space<vmem>>, vector<8x36xf32>
    tpu.vector_store %arg15[%c32, %c0_65], %87 {strides = array<i32>} : memref<40x36xf32, #tpu.memory_space<vmem>>, vector<8x36xf32>,
    %c0_66 = arith.constant 0 : index
    %c0_67 = arith.constant 0 : index
    %89 = vector.load %arg15[%c0_66, %c0_67] : memref<40x36xf32, #tpu.memory_space<vmem>>, vector<40x36xf32>
    %cst_68 = arith.constant dense<0.000000e+00> : vector<8x36xf32>
    %90 = tpu.matmul %78, %89, %cst_68 {dimension_numbers = #tpu.dot_dimension_numbers<[1], [0], [0], [1], [0, 0, 1, 1], [], []>} : vector<8x40xf32>, vector<40x36xf32>, vector<8x36xf32> -> vector<8x36xf32>
    %cst_69 = arith.constant 0.000000e+00 : f32
    %91 = vector.shape_cast %18 : vector<1x36xi1> to vector<1x36xi1>
    %92 = vector.broadcast %91 : vector<1x36xi1> to vector<8x36xi1>
    %93 = vector.broadcast %cst_69 : f32 to vector<8x36xf32>
    %94 = arith.select %92, %90, %93 : vector<8x36xi1>, vector<8x36xf32>
    %cst_70 = arith.constant dense<0.000000e+00> : vector<8xf32>
    %95 = vector.multi_reduction <add>, %94, %cst_70 [1] : vector<8x36xf32> to vector<8xf32>
    %96 = vector.shape_cast %95 : vector<8xf32> to vector<8x1xf32>
    %cst_71 = arith.constant 3.125000e-02 : f32
    %97 = vector.broadcast %cst_71 : f32 to vector<8x1xf32>
    %98 = arith.mulf %96, %97 : vector<8x1xf32>
    %99 = vector.broadcast %98 : vector<8x1xf32> to vector<8x36xf32>
    %100 = arith.subf %90, %99 : vector<8x36xf32>
    %cst_72 = arith.constant 0.000000e+00 : f32
    %101 = vector.shape_cast %18 : vector<1x36xi1> to vector<1x36xi1>
    %102 = vector.broadcast %101 : vector<1x36xi1> to vector<8x36xi1>
    %103 = vector.broadcast %cst_72 : f32 to vector<8x36xf32>
    %104 = arith.select %102, %100, %103 : vector<8x36xi1>, vector<8x36xf32>
    %105 = arith.mulf %104, %104 : vector<8x36xf32>
    %cst_73 = arith.constant dense<0.000000e+00> : vector<8xf32>
    %106 = vector.multi_reduction <add>, %105, %cst_73 [1] : vector<8x36xf32> to vector<8xf32>
    %107 = vector.shape_cast %106 : vector<8xf32> to vector<8x1xf32>
    %cst_74 = arith.constant 3.125000e-02 : f32
    %108 = vector.broadcast %cst_74 : f32 to vector<8x1xf32>
    %109 = arith.mulf %107, %108 : vector<8x1xf32>
    %c0_75 = arith.constant 0 : index
    %c0_76 = arith.constant 0 : index
    %110 = vector.load %arg5[%c0_75, %c0_76] : memref<8x1xf32, #tpu.memory_space<vmem>>, vector<8x1xf32>
    %cst_77 = arith.constant 9.99999974E-6 : f32
    %111 = vector.broadcast %cst_77 : f32 to vector<8x1xf32>
    %112 = arith.addf %109, %111 : vector<8x1xf32>
    %113 = math.rsqrt %112 : vector<8x1xf32>
    %114 = arith.mulf %110, %113 : vector<8x1xf32>
    %115 = vector.broadcast %114 : vector<8x1xf32> to vector<8x36xf32>
    %116 = arith.mulf %100, %115 : vector<8x36xf32>
    %c0_78 = arith.constant 0 : index
    %c0_79 = arith.constant 0 : index
    %117 = vector.load %arg6[%c0_78, %c0_79] : memref<8x1xf32, #tpu.memory_space<vmem>>, vector<8x1xf32>
    %118 = vector.broadcast %117 : vector<8x1xf32> to vector<8x36xf32>
    %119 = arith.addf %116, %118 : vector<8x36xf32>
    %cst_80 = arith.constant 0.000000e+00 : f32
    %120 = vector.broadcast %cst_80 : f32 to vector<8x36xf32>
    %121 = arith.maximumf %119, %120 : vector<8x36xf32>
    %cst_81 = arith.constant 0.000000e+00 : f32
    %122 = vector.shape_cast %18 : vector<1x36xi1> to vector<1x36xi1>
    %123 = vector.broadcast %122 : vector<1x36xi1> to vector<8x36xi1>
    %124 = vector.broadcast %cst_81 : f32 to vector<8x36xf32>
    %125 = arith.select %123, %121, %124 : vector<8x36xi1>, vector<8x36xf32>
    %c0_82 = arith.constant 0 : index
    %c3_83 = arith.constant 3 : index
    %126 = vector.load %arg14[%c0_82, %c3_83] : memref<8x43xf32, #tpu.memory_space<vmem>>, vector<8x36xf32>
    tpu.vector_store %arg14[%c0_82, %c3_83], %125 {strides = array<i32>} : memref<8x43xf32, #tpu.memory_space<vmem>>, vector<8x36xf32>,
    %c0_84 = arith.constant 0 : index
    %c0_85 = arith.constant 0 : index
    %127 = vector.load %arg7[%c0_84, %c0_85] : memref<8x24xf32, #tpu.memory_space<vmem>>, vector<8x24xf32>
    %c0_86 = arith.constant 0 : index
    %c2_87 = arith.constant 2 : index
    %128 = vector.load %arg14[%c0_86, %c2_87] : memref<8x43xf32, #tpu.memory_space<vmem>>, vector<8x36xf32>
    %c0_88 = arith.constant 0 : index
    %c0_89 = arith.constant 0 : index
    %129 = vector.load %arg15[%c0_88, %c0_89] : memref<40x36xf32, #tpu.memory_space<vmem>>, vector<8x36xf32>
    tpu.vector_store %arg15[%c0_88, %c0_89], %128 {strides = array<i32>} : memref<40x36xf32, #tpu.memory_space<vmem>>, vector<8x36xf32>,
    %c0_90 = arith.constant 0 : index
    %c3_91 = arith.constant 3 : index
    %130 = vector.load %arg14[%c0_90, %c3_91] : memref<8x43xf32, #tpu.memory_space<vmem>>, vector<8x36xf32>
    %c8_92 = arith.constant 8 : index
    %c0_93 = arith.constant 0 : index
    %131 = vector.load %arg15[%c8_92, %c0_93] : memref<40x36xf32, #tpu.memory_space<vmem>>, vector<8x36xf32>
    tpu.vector_store %arg15[%c8_92, %c0_93], %130 {strides = array<i32>} : memref<40x36xf32, #tpu.memory_space<vmem>>, vector<8x36xf32>,
    %c0_94 = arith.constant 0 : index
    %c4_95 = arith.constant 4 : index
    %132 = vector.load %arg14[%c0_94, %c4_95] : memref<8x43xf32, #tpu.memory_space<vmem>>, vector<8x36xf32>
    %c16_96 = arith.constant 16 : index
    %c0_97 = arith.constant 0 : index
    %133 = vector.load %arg15[%c16_96, %c0_97] : memref<40x36xf32, #tpu.memory_space<vmem>>, vector<8x36xf32>
    tpu.vector_store %arg15[%c16_96, %c0_97], %132 {strides = array<i32>} : memref<40x36xf32, #tpu.memory_space<vmem>>, vector<8x36xf32>,
    %c0_98 = arith.constant 0 : index
    %c0_99 = arith.constant 0 : index
    %134 = vector.load %arg15[%c0_98, %c0_99] : memref<40x36xf32, #tpu.memory_space<vmem>>, vector<24x36xf32>
    %cst_100 = arith.constant dense<0.000000e+00> : vector<8x36xf32>
    %135 = tpu.matmul %127, %134, %cst_100 {dimension_numbers = #tpu.dot_dimension_numbers<[1], [0], [0], [1], [0, 0, 1, 1], [], []>} : vector<8x24xf32>, vector<24x36xf32>, vector<8x36xf32> -> vector<8x36xf32>
    %cst_101 = arith.constant 0.000000e+00 : f32
    %136 = vector.shape_cast %18 : vector<1x36xi1> to vector<1x36xi1>
    %137 = vector.broadcast %136 : vector<1x36xi1> to vector<8x36xi1>
    %138 = vector.broadcast %cst_101 : f32 to vector<8x36xf32>
    %139 = arith.select %137, %135, %138 : vector<8x36xi1>, vector<8x36xf32>
    %cst_102 = arith.constant dense<0.000000e+00> : vector<8xf32>
    %140 = vector.multi_reduction <add>, %139, %cst_102 [1] : vector<8x36xf32> to vector<8xf32>
    %141 = vector.shape_cast %140 : vector<8xf32> to vector<8x1xf32>
    %cst_103 = arith.constant 3.125000e-02 : f32
    %142 = vector.broadcast %cst_103 : f32 to vector<8x1xf32>
    %143 = arith.mulf %141, %142 : vector<8x1xf32>
    %144 = vector.broadcast %143 : vector<8x1xf32> to vector<8x36xf32>
    %145 = arith.subf %135, %144 : vector<8x36xf32>
    %cst_104 = arith.constant 0.000000e+00 : f32
    %146 = vector.shape_cast %18 : vector<1x36xi1> to vector<1x36xi1>
    %147 = vector.broadcast %146 : vector<1x36xi1> to vector<8x36xi1>
    %148 = vector.broadcast %cst_104 : f32 to vector<8x36xf32>
    %149 = arith.select %147, %145, %148 : vector<8x36xi1>, vector<8x36xf32>
    %150 = arith.mulf %149, %149 : vector<8x36xf32>
    %cst_105 = arith.constant dense<0.000000e+00> : vector<8xf32>
    %151 = vector.multi_reduction <add>, %150, %cst_105 [1] : vector<8x36xf32> to vector<8xf32>
    %152 = vector.shape_cast %151 : vector<8xf32> to vector<8x1xf32>
    %cst_106 = arith.constant 3.125000e-02 : f32
    %153 = vector.broadcast %cst_106 : f32 to vector<8x1xf32>
    %154 = arith.mulf %152, %153 : vector<8x1xf32>
    %c0_107 = arith.constant 0 : index
    %c0_108 = arith.constant 0 : index
    %155 = vector.load %arg8[%c0_107, %c0_108] : memref<8x1xf32, #tpu.memory_space<vmem>>, vector<8x1xf32>
    %cst_109 = arith.constant 9.99999974E-6 : f32
    %156 = vector.broadcast %cst_109 : f32 to vector<8x1xf32>
    %157 = arith.addf %154, %156 : vector<8x1xf32>
    %158 = math.rsqrt %157 : vector<8x1xf32>
    %159 = arith.mulf %155, %158 : vector<8x1xf32>
    %160 = vector.broadcast %159 : vector<8x1xf32> to vector<8x36xf32>
    %161 = arith.mulf %145, %160 : vector<8x36xf32>
    %c0_110 = arith.constant 0 : index
    %c0_111 = arith.constant 0 : index
    %162 = vector.load %arg9[%c0_110, %c0_111] : memref<8x1xf32, #tpu.memory_space<vmem>>, vector<8x1xf32>
    %163 = vector.broadcast %162 : vector<8x1xf32> to vector<8x36xf32>
    %164 = arith.addf %161, %163 : vector<8x36xf32>
    %cst_112 = arith.constant 0.000000e+00 : f32
    %165 = vector.broadcast %cst_112 : f32 to vector<8x36xf32>
    %166 = arith.maximumf %164, %165 : vector<8x36xf32>
    %c0_113 = arith.constant 0 : index
    %c0_114 = arith.constant 0 : index
    %167 = vector.load %arg10[%c0_113, %c0_114] : memref<8x4xf32, #tpu.memory_space<vmem>>, vector<8x4xf32>
    %c0_115 = arith.constant 0 : index
    %c3_116 = arith.constant 3 : index
    %168 = vector.load %arg0[%c0_115, %c3_116] : memref<4x43xf32, #tpu.memory_space<vmem>>, vector<4x36xf32>
    %cst_117 = arith.constant dense<0.000000e+00> : vector<8x36xf32>
    %169 = tpu.matmul %167, %168, %cst_117 {dimension_numbers = #tpu.dot_dimension_numbers<[1], [0], [0], [1], [0, 0, 1, 1], [], []>} : vector<8x4xf32>, vector<4x36xf32>, vector<8x36xf32> -> vector<8x36xf32>
    %cst_118 = arith.constant 0.000000e+00 : f32
    %170 = vector.shape_cast %18 : vector<1x36xi1> to vector<1x36xi1>
    %171 = vector.broadcast %170 : vector<1x36xi1> to vector<8x36xi1>
    %172 = vector.broadcast %cst_118 : f32 to vector<8x36xf32>
    %173 = arith.select %171, %169, %172 : vector<8x36xi1>, vector<8x36xf32>
    %cst_119 = arith.constant dense<0.000000e+00> : vector<8xf32>
    %174 = vector.multi_reduction <add>, %173, %cst_119 [1] : vector<8x36xf32> to vector<8xf32>
    %175 = vector.shape_cast %174 : vector<8xf32> to vector<8x1xf32>
    %cst_120 = arith.constant 3.125000e-02 : f32
    %176 = vector.broadcast %cst_120 : f32 to vector<8x1xf32>
    %177 = arith.mulf %175, %176 : vector<8x1xf32>
    %178 = vector.broadcast %177 : vector<8x1xf32> to vector<8x36xf32>
    %179 = arith.subf %169, %178 : vector<8x36xf32>
    %cst_121 = arith.constant 0.000000e+00 : f32
    %180 = vector.shape_cast %18 : vector<1x36xi1> to vector<1x36xi1>
    %181 = vector.broadcast %180 : vector<1x36xi1> to vector<8x36xi1>
    %182 = vector.broadcast %cst_121 : f32 to vector<8x36xf32>
    %183 = arith.select %181, %179, %182 : vector<8x36xi1>, vector<8x36xf32>
    %184 = arith.mulf %183, %183 : vector<8x36xf32>
    %cst_122 = arith.constant dense<0.000000e+00> : vector<8xf32>
    %185 = vector.multi_reduction <add>, %184, %cst_122 [1] : vector<8x36xf32> to vector<8xf32>
    %186 = vector.shape_cast %185 : vector<8xf32> to vector<8x1xf32>
    %cst_123 = arith.constant 3.125000e-02 : f32
    %187 = vector.broadcast %cst_123 : f32 to vector<8x1xf32>
    %188 = arith.mulf %186, %187 : vector<8x1xf32>
    %c0_124 = arith.constant 0 : index
    %c0_125 = arith.constant 0 : index
    %189 = vector.load %arg11[%c0_124, %c0_125] : memref<8x1xf32, #tpu.memory_space<vmem>>, vector<8x1xf32>
    %cst_126 = arith.constant 9.99999974E-6 : f32
    %190 = vector.broadcast %cst_126 : f32 to vector<8x1xf32>
    %191 = arith.addf %188, %190 : vector<8x1xf32>
    %192 = math.rsqrt %191 : vector<8x1xf32>
    %193 = arith.mulf %189, %192 : vector<8x1xf32>
    %194 = vector.broadcast %193 : vector<8x1xf32> to vector<8x36xf32>
    %195 = arith.mulf %179, %194 : vector<8x36xf32>
    %c0_127 = arith.constant 0 : index
    %c0_128 = arith.constant 0 : index
    %196 = vector.load %arg12[%c0_127, %c0_128] : memref<8x1xf32, #tpu.memory_space<vmem>>, vector<8x1xf32>
    %197 = vector.broadcast %196 : vector<8x1xf32> to vector<8x36xf32>
    %198 = arith.addf %195, %197 : vector<8x36xf32>
    %199 = arith.addf %166, %198 : vector<8x36xf32>
    %c0_129 = arith.constant 0 : index
    %c0_130 = arith.constant 0 : index
    %200 = vector.load %arg13[%c0_129, %c0_130] : memref<8x36xf32, #tpu.memory_space<vmem>>, vector<8x36xf32>
    tpu.vector_store %arg13[%c0_129, %c0_130], %199 {strides = array<i32>} : memref<8x36xf32, #tpu.memory_space<vmem>>, vector<8x36xf32>,
    return
  }
}

</mosaic_0001>

<bundles_post_ra>
// kernel: tpu_custom_call.1
= control target key start
LH: loop header
LB: loop body
LE: loop exit
PB: predicated region body
PF: predicated region fallthrough
CT: control target
= control target key end

     0   :  { %s737_s29 = smov 122   ;;  %s738_s30 = smov 124   ;;  %vm70_vm0 = vcmask 289792   ;;  %s979_s0 = inlined_call_operand.vmem [shape: f32[4,43], index: 0, kind: input, shape index: {}]   ;;  %s980_s1 = inlined_call_operand.vmem [shape: f32[8,32], index: 1, kind: input, shape index: {}]   ;;  %s981_s2 = inlined_call_operand.vmem [shape: f32[8,1], index: 2, kind: input, shape index: {}]   ;;  %s982_s3 = inlined_call_operand.vmem [shape: f32[8,1], index: 3, kind: input, shape index: {}]   ;;  %s983_s4 = inlined_call_operand.vmem [shape: f32[8,40], index: 4, kind: input, shape index: {}]   ;;  %s984_s5 = inlined_call_operand.vmem [shape: f32[8,1], index: 5, kind: input, shape index: {}]   ;;  %s985_s6 = inlined_call_operand.vmem [shape: f32[8,1], index: 6, kind: input, shape index: {}]   ;;  %s986_s7 = inlined_call_operand.vmem [shape: f32[8,24], index: 7, kind: input, shape index: {}]   ;;  %s987_s8 = inlined_call_operand.vmem [shape: f32[8,1], index: 8, kind: input, shape index: {}]   ;;  %s988_s9 = inlined_call_operand.vmem [shape: f32[8,1], index: 9, kind: input, shape index: {}]   ;;  %s989_s10 = inlined_call_operand.vmem [shape: f32[8,4], index: 10, kind: input, shape index: {}]   ;;  %s990_s11 = inlined_call_operand.vmem [shape: f32[8,1], index: 11, kind: input, shape index: {}]   ;;  %s991_s12 = inlined_call_operand.vmem [shape: f32[8,1], index: 12, kind: input, shape index: {}]   ;;  %s992_s13 = inlined_call_operand.hbm [shape: f32[8,36], index: 13, kind: output, shape index: {}]  }
   0x1   :  { %v102_v0 = vld [vmem:[%s979_s0] sm:$0xf] }
   0x2   :  { %v90_v1 = vld [vmem:[%s979_s0] sm:$0xf]  ;;  %104 = vrot.lane.b32.xlu0 %v102_v0, %s737_s29 }
   0x3   :  { %92 = vrot.lane.b32.xlu1 %v90_v1, %s738_s30  ;;  %v108_v2 = vld [vmem:[%s979_s0] sm:$0xf] }
   0x4   :  { %v96_v3 = vld [vmem:[%s979_s0] sm:$0xf] }
   0x5   :  { %v69_v4 = vld [vmem:[%s979_s0] sm:$0xf] }
   0x6   :  { %71 = vst.msk [vmem:[#allocation3] sm:$0xf] %vm70_vm0, %v69_v4 }
   0x7   :  { %18 = vsyncpa [#allocation5], 0  ;;  %s739_s20 = smov 121   ;;  %s740_s21 = smov 123   ;;  %v84_v5 = vld [vmem:[%s979_s0] sm:$0xf]  ;;  %v45_v21 = vlaneseq }
   0x8   :  { %110 = vrot.lane.b32.xlu0 %v108_v2, %s739_s20  ;;  %98 = vrot.lane.b32.xlu1 %v96_v3, %s740_s21  ;;  %v78_v6 = vld [vmem:[%s979_s0] sm:$0xf]  ;;  %v741_v7 = vmov 0.0   ;;  %vm742_vm1 = vmmov 0   ;;  %s743_s26 = smov 125   ;;  %s744_s27 = smov 126  }
   0x9   :  { %653 = vmatprep.subr.mxu0 %v741_v7  ;;  %664 = vmatprep.subr.mxu1 %v741_v7  ;;  %v72_v8 = vld [vmem:[%s979_s0] sm:$0xf]  ;;  %s745_s14 = smov 127   ;;  %vm118_vm2 = vcmask 261120   ;;  %v46_v22 = vand.u32 127, %v45_v21  ;;  %vm195_vm7 = vcmask 293888  }
   0xa   :  { %661 = vmatprep.mubr.msk.f32.mxu0 %vm742_vm1, %v741_v7  ;;  %674 = vmatprep.mubr.msk.f32.mxu1 %vm742_vm1, %v741_v7  ;;  %v68_v19 = vld [vmem:[%s980_s1] sm:$0xff]  ;;  %v746_v41 = vmov 0   ;;  %vm64_vm8 = vcmask 23552   ;;  %vm66_vm9 = vcmask 351544   ;;  %vm230_vm10 = vcmask 318488  }
   0xb   :  { %v871_v23 = vmul.u32.u64.low 3435973837, %v46_v22  ;;  %v872_v24 = vmul.u32.u64.high 3435973837, %v46_v22, %v871_v23  ;;  %705 = vset.pattern.permute.xlu0 %v746_v41  ;;  %706 = vset.pattern.permute.xlu1 %v746_v41  ;;  %v217_v42 = vld [vmem:[%s982_s3] sm:$0xff]  ;;  %65 = vst.msk [vmem:[#allocation2] sm:$0xff] %vm64_vm8, %v741_v7  ;;  %s747_s3 = smov 3   ;;  %vm268_vm11 = vcmask 326656  }
   0xc   :  { %86 = vrot.lane.b32.xlu1 %v84_v5, %s743_s26  ;;  %80 = vrot.lane.b32.xlu0 %v78_v6, %s744_s27  ;;  %v207_v46 = vld [vmem:[%s981_s2] sm:$0xff]  ;;  %67 = vst.msk [vmem:[#allocation2] sm:$0xff] %vm66_vm9, %v741_v7  ;;  %vm513_vm12 = vcmask 1043456   ;;  %vm509_vm13 = vcmask 31744   ;;  %vm400_vm14 = vcmask 195584  }
   0xd   :  { %v53_v25 = vshrl.u32 %v872_v24, 4  ;;  %v232_v2 = vld [vmem:[%s983_s4] sm:$0xff] }
   0xf   :  { %v54_v26 = vmul.u32 20, %v53_v25 }
  0x10   :  { %74 = vrot.lane.b32.xlu0 %v72_v8, %s745_s14 }
  0x11   :  { %v55_v27 = vsub.s32 %v46_v22, %v54_v26 }
  0x13   :  { %vm58_vm3 = vcmp.ne.s32.totalorder %v55_v27, 0  ;;  %vm59_vm4 = vcmp.lt.s32.totalorder %v55_v27, 0  ;;  %v61_v28 = vadd.s32 20, %v55_v27 }
  0x14   :  { %vm60_vm5 = vmand %vm59_vm4, %vm58_vm3 }
  0x15   :  { %v62_v29 = vsel %vm60_vm5, %v61_v28, %v55_v27 }
  0x16   :  { %vm875_vm6 = vcmp.lt.s32.totalorder %v62_v29, 16 }
  0x74   :  { %v105_v9 = vpop.permute.xlu0 %104 }
  0x75   :  { %v93_v10 = vpop.permute.xlu1 %92  ;;  %107 = vst.msk [vmem:[#allocation3 + $0x18] sm:$0xf] %vm70_vm0, %v105_v9  ;;  %v364_v9 = vld [vmem:[%s985_s6] sm:$0xff] }
  0x76   :  { %95 = vst.msk [vmem:[#allocation3 + $0x10] sm:$0xf] %vm70_vm0, %v93_v10 }
  0x7a   :  { %v111_v11 = vpop.permute.xlu0 %110  ;;  %v99_v12 = vpop.permute.xlu1 %98 }
  0x7b   :  { %113 = vst.msk [vmem:[#allocation3 + $0x1c] sm:$0xf] %vm70_vm0, %v111_v11  ;;  %101 = vst.msk [vmem:[#allocation3 + $0x14] sm:$0xf] %vm70_vm0, %v99_v12 }
  0x7e   :  { %v87_v13 = vpop.permute.xlu1 %86  ;;  %v81_v14 = vpop.permute.xlu0 %80 }
  0x7f   :  { %89 = vst.msk [vmem:[#allocation3 + $0xc] sm:$0xf] %vm70_vm0, %v87_v13  ;;  %83 = vst.msk [vmem:[#allocation3 + $0x8] sm:$0xf] %vm70_vm0, %v81_v14 }
  0x82   :  { %v75_v15 = vpop.permute.xlu0 %74  ;;  %v117_v16 = vld [vmem:[#allocation3 + $0x18] sm:$0xff]  ;;  %v116_v17 = vld [vmem:[#allocation3 + $0x10] sm:$0xff] }
  0x83   :  { %77 = vst.msk [vmem:[#allocation3 + $0x4] sm:$0xf] %vm70_vm0, %v75_v15  ;;  %654 = vmatpush3.msra.mxu0 %v117_v16 }
  0x84   :  { %655 = vmatprep.subr.mxu0 %v741_v7 }
  0x85   :  { %656 = vmatpush3.msra.mxu0 %v116_v17 }
  0x86   :  { %657 = vmatprep.subr.mxu0 %v741_v7  ;;  %v115_v18 = vld [vmem:[#allocation3 + $0x8] sm:$0xff] }
  0x87   :  { %658 = vmatpush3.msra.mxu0 %v115_v18 }
  0x88   :  { %659 = vmatprep.subr.mxu0 %v741_v7 }
  0x8a   :  { %v114_v20 = vld [vmem:[#allocation3] sm:$0xff] }
  0x8b   :  { %660 = vmatpush3.msra.mxu0 %v114_v20 }
  0x8c   :  { %662 = vmatmul.mubr.msk.f32.vlgmr.msra.gmra.mxu0 %vm118_vm2, %v68_v19  ;;  %677 = vmatprep.subr.mxu0 %v741_v7  ;;  %v354_v19 = vld [vmem:[%s984_s5] sm:$0xff] }
  0x8d   :  { %683 = vmatprep.mubr.msk.f32.mxu0 %vm742_vm1, %v741_v7 }
 0x14c   :  { %v188_v31 = vpop.f32.mrf.mxu0 }
 0x14d   :  { %v194_v32 = vsel %vm875_vm6, %v188_v31, 0.0 }
 0x14e   :  { %v663_v33 = vpop.f32.mrf.mxu0  ;;  %v196_v34 = vsel %vm195_vm7, %v194_v32, 0.0 }
 0x14f   :  { %197 = vadd.xlane.f32.xlu1 %v196_v34  ;;  %v504_v34 = vld [vmem:[%s989_s10] sm:$0xff] }
 0x160   :  { %220 = vperm.xlu1 %706, %v217_v42  }
 0x1d8   :  { %v198_v35 = vpop.xlane.xlu1 %197 }
 0x1d9   :  { %v199_v36 = vmul.f32 0.03125, %v198_v35 }
 0x1db   :  { %v200_v37 = vsub.f32 %v188_v31, %v199_v36  ;;  %v505_v31 = vld [vmem:[%s979_s0] sm:$0xf] }
 0x1dc   :  { %v221_v50 = vpop.permute.xlu1 %220 }
 0x1dd   :  { %v201_v38 = vsel %vm875_vm6, %v200_v37, 0.0 }
 0x1de   :  { %v202_v39 = vmul.f32 %v201_v38, %v201_v38 }
 0x1e0   :  { %v203_v40 = vsel %vm195_vm7, %v202_v39, 0.0  ;;  %v378_v39 = vld [vmem:[%s986_s7] sm:$0xff] }
 0x1e1   :  { %204 = vadd.xlane.f32.xlu0 %v203_v40 }
 0x26a   :  { %v205_v43 = vpop.xlane.xlu0 %204 }
 0x26b   :  { %v206_v44 = vmul.f32 0.03125, %v205_v43 }
 0x26d   :  { %v208_v45 = vadd.f32 1e-05, %v206_v44 }
 0x26f   :  { %707 = vrsqrt.f32 %v208_v45 }
 0x27c   :  { %v708_v47 = vpop.eup %707 }
 0x27d   :  { %v210_v48 = vmul.f32 %v708_v47, %v207_v46 }
 0x27f   :  { %213 = vperm.xlu0 %705, %v210_v48  }
 0x2fa   :  { %v214_v49 = vpop.permute.xlu0 %213 }
 0x2fb   :  { %v216_v51 = vmul.f32 %v214_v49, %v200_v37 }
 0x2fd   :  { %v223_v52 = vadd.f32 %v221_v50, %v216_v51 }
 0x2ff   :  { %v224_v53 = vmax.f32 %v223_v52, 0.0 }
 0x301   :  { %v225_v54 = vsel %vm875_vm6, %v224_v53, 0.0 }
 0x302   :  { %227 = vrot.lane.b32.xlu1 %v225_v54, %s747_s3 }
 0x374   :  { %v228_v55 = vpop.permute.xlu1 %227 }
 0x375   :  { %231 = vst.msk [vmem:[#allocation2] sm:$0xff] %vm230_vm10, %v228_v55 }
 0x37c   :  { %v257_v56 = vld [vmem:[#allocation2] sm:$0xff] }
 0x37d   :  { %259 = vrot.lane.b32.xlu1 %v257_v56, %s740_s21 }
 0x381   :  { %253 = vrot.lane.b32.xlu1 %v257_v56, %s738_s30 }
 0x385   :  { %247 = vrot.lane.b32.xlu1 %v257_v56, %s743_s26 }
 0x389   :  { %241 = vrot.lane.b32.xlu1 %v257_v56, %s744_s27 }
 0x38d   :  { %235 = vrot.lane.b32.xlu1 %v257_v56, %s745_s14 }
 0x3ef   :  { %v260_v57 = vpop.permute.xlu1 %259 }
 0x3f0   :  { %262 = vst.msk [vmem:[#allocation3 + $0x20] sm:$0xff] %vm195_vm7, %v260_v57 }
 0x3f3   :  { %v254_v58 = vpop.permute.xlu1 %253 }
 0x3f4   :  { %256 = vst.msk [vmem:[#allocation3 + $0x18] sm:$0xff] %vm195_vm7, %v254_v58 }
 0x3f7   :  { %v248_v59 = vpop.permute.xlu1 %247  ;;  %v267_v60 = vld [vmem:[#allocation3 + $0x20] sm:$0xff] }
 0x3f8   :  { %250 = vst.msk [vmem:[#allocation3 + $0x10] sm:$0xff] %vm195_vm7, %v248_v59  ;;  %665 = vmatpush3.msra.mxu1 %v267_v60  ;;  %v496_v60 = vld [vmem:[%s988_s9] sm:$0xff] }
 0x3f9   :  { %666 = vmatprep.subr.mxu1 %v741_v7 }
 0x3fb   :  { %v242_v61 = vpop.permute.xlu1 %241  ;;  %v266_v62 = vld [vmem:[#allocation3 + $0x18] sm:$0xff] }
 0x3fc   :  { %244 = vst.msk [vmem:[#allocation3 + $0x8] sm:$0xff] %vm195_vm7, %v242_v61  ;;  %667 = vmatpush3.msra.mxu1 %v266_v62 }
 0x3fd   :  { %668 = vmatprep.subr.mxu1 %v741_v7 }
 0x3ff   :  { %v236_v63 = vpop.permute.xlu1 %235  ;;  %v265_v0 = vld [vmem:[#allocation3 + $0x10] sm:$0xff] }
 0x400   :  { %238 = vst.msk [vmem:[#allocation3] sm:$0xff] %vm195_vm7, %v236_v63  ;;  %669 = vmatpush3.msra.mxu1 %v265_v0 }
 0x401   :  { %670 = vmatprep.subr.mxu1 %v741_v7 }
 0x403   :  { %v264_v1 = vld [vmem:[#allocation3 + $0x8] sm:$0xff] }
 0x404   :  { %671 = vmatpush3.msra.mxu1 %v264_v1 }
 0x405   :  { %672 = vmatprep.subr.mxu1 %v741_v7 }
 0x407   :  { %v263_v3 = vld [vmem:[#allocation3] sm:$0xff] }
 0x408   :  { %673 = vmatpush3.msra.mxu1 %v263_v3 }
 0x409   :  { %675 = vmatmul.mubr.msk.f32.vlgmr.msra.gmra.mxu1 %vm268_vm11, %v232_v2  ;;  %686 = vmatprep.subr.mxu1 %v741_v7  ;;  %v598_v2 = vld [vmem:[%s990_s11] sm:$0xff]  ;;  %s748_s11 = smov [#allocation4]  }
 0x40a   :  { %688 = vmatprep.mubr.msk.f32.mxu1 %vm742_vm1, %v741_v7  ;;  %s623_s15 = sshll.u32 %s748_s11, 4  ;;  %s624_s15 = int_to_ptr.vmem [resolvable:$true] %s623_s15 }
 0x40b   :  { %p720_p1 = scmp.lt.s32.totalorder %s624_s15, %s624_s15 }
 0x4c9   :  { %v338_v4 = vpop.f32.mrf.mxu1 }
 0x4ca   :  { %v342_v5 = vsel %vm875_vm6, %v338_v4, 0.0 }
 0x4cb   :  { %v676_v6 = vpop.f32.mrf.mxu1  ;;  %v343_v8 = vsel %vm195_vm7, %v342_v5, 0.0 }
 0x4cc   :  { %344 = vadd.xlane.f32.xlu1 %v343_v8  ;;  %v486_v6 = vld [vmem:[%s987_s8] sm:$0xff]  ;;  %s715_s8 = scalar_lea.vmem %s624_s15, 128 }
 0x4cd   :  { %p716_p0 = scmp.ne.s32.totalorder %s624_s15, %s715_s8  ;;  %p721_p2 = scmp.lt.s32.totalorder %s715_s8, %s715_s8 }
 0x4cf   :  { %p722_p3 = por %p721_p2, %p720_p1 }
 0x4d1   :  { %p723_p4 = pnand %p722_p3, %p716_p0 }
 0x4dd   :  { %367 = vperm.xlu1 %706, %v364_v9   ;;  %v608_v9 = vld [vmem:[%s991_s12] sm:$0xff] }
 0x555   :  { %v345_v10 = vpop.xlane.xlu1 %344 }
 0x556   :  { %v346_v11 = vmul.f32 0.03125, %v345_v10 }
 0x558   :  { %v347_v12 = vsub.f32 %v338_v4, %v346_v11 }
 0x559   :  { %v368_v24 = vpop.permute.xlu1 %367 }
 0x55a   :  { %v348_v13 = vsel %vm875_vm6, %v347_v12, 0.0 }
 0x55b   :  { %v349_v14 = vmul.f32 %v348_v13, %v348_v13 }
 0x55d   :  { %v350_v15 = vsel %vm195_vm7, %v349_v14, 0.0 }
 0x55e   :  { %351 = vadd.xlane.f32.xlu0 %v350_v15 }
 0x5e7   :  { %v352_v16 = vpop.xlane.xlu0 %351 }
 0x5e8   :  { %v353_v17 = vmul.f32 0.03125, %v352_v16 }
 0x5ea   :  { %v355_v18 = vadd.f32 1e-05, %v353_v17 }
 0x5ec   :  { %709 = vrsqrt.f32 %v355_v18 }
 0x5f9   :  { %v710_v20 = vpop.eup %709 }
 0x5fa   :  { %v357_v21 = vmul.f32 %v710_v20, %v354_v19 }
 0x5fc   :  { %360 = vperm.xlu0 %705, %v357_v21  }
 0x677   :  { %v361_v22 = vpop.permute.xlu0 %360 }
 0x678   :  { %v363_v23 = vmul.f32 %v361_v22, %v347_v12 }
 0x67a   :  { %v370_v25 = vadd.f32 %v368_v24, %v363_v23 }
 0x67c   :  { %v371_v26 = vmax.f32 %v370_v25, 0.0 }
 0x67e   :  { %v372_v27 = vsel %vm875_vm6, %v371_v26, 0.0 }
 0x67f   :  { %374 = vrot.lane.b32.xlu1 %v372_v27, %s747_s3 }
 0x6f1   :  { %v375_v28 = vpop.permute.xlu1 %374 }
 0x6f2   :  { %377 = vst.msk [vmem:[#allocation2] sm:$0xff] %vm230_vm10, %v375_v28 }
 0x6f9   :  { %v391_v29 = vld [vmem:[#allocation2] sm:$0xff] }
 0x6fa   :  { %393 = vrot.lane.b32.xlu0 %v391_v29, %s738_s30  ;;  %387 = vrot.lane.b32.xlu1 %v391_v29, %s743_s26 }
 0x6fe   :  { %507 = vrot.lane.b32.xlu1 %v505_v31, %s743_s26  ;;  %381 = vrot.lane.b32.xlu0 %v391_v29, %s744_s27 }
 0x76c   :  { %v394_v32 = vpop.permute.xlu0 %393  ;;  %v388_v33 = vpop.permute.xlu1 %387 }
 0x76d   :  { %396 = vst.msk [vmem:[#allocation3 + $0x10] sm:$0xff] %vm195_vm7, %v394_v32  ;;  %390 = vst.msk [vmem:[#allocation3 + $0x8] sm:$0xff] %vm195_vm7, %v388_v33 }
 0x770   :  { %v508_v35 = vpop.permute.xlu1 %507  ;;  %v382_v36 = vpop.permute.xlu0 %381 }
 0x771   :  { %384 = vst.msk [vmem:[#allocation3] sm:$0xff] %vm195_vm7, %v382_v36  ;;  %687 = vmatpush3.msk.msra.mxu1 %vm513_vm12, %v508_v35 }
 0x772   :  { %689 = vmatmul.mubr.msk.f32.vlgmr.msra.gmra.mxu1 %vm509_vm13, %v504_v34 }
 0x774   :  { %v399_v37 = vld [vmem:[#allocation3 + $0x10] sm:$0xff]  ;;  %v398_v38 = vld [vmem:[#allocation3 + $0x8] sm:$0xff] }
 0x775   :  { %678 = vmatpush3.msra.mxu0 %v399_v37 }
 0x776   :  { %679 = vmatprep.subr.mxu0 %v741_v7 }
 0x777   :  { %680 = vmatpush3.msra.mxu0 %v398_v38 }
 0x778   :  { %681 = vmatprep.subr.mxu0 %v741_v7  ;;  %v397_v40 = vld [vmem:[#allocation3] sm:$0xff] }
 0x779   :  { %682 = vmatpush3.msra.mxu0 %v397_v40 }
 0x77a   :  { %684 = vmatmul.mubr.msk.f32.vlgmr.msra.gmra.mxu0 %vm400_vm14, %v378_v39 }
 0x832   :  { %v582_v41 = vpop.f32.mrf.mxu1 }
 0x833   :  { %v586_v42 = vsel %vm875_vm6, %v582_v41, 0.0 }
 0x834   :  { %v587_v43 = vsel %vm195_vm7, %v586_v42, 0.0  ;;  %v690_v44 = vpop.f32.mrf.mxu1 }
 0x835   :  { %588 = vadd.xlane.f32.xlu1 %v587_v43 }
 0x83a   :  { %v470_v45 = vpop.f32.mrf.mxu0 }
 0x83b   :  { %v474_v46 = vsel %vm875_vm6, %v470_v45, 0.0 }
 0x83c   :  { %v685_v47 = vpop.f32.mrf.mxu0  ;;  %v475_v48 = vsel %vm195_vm7, %v474_v46, 0.0 }
 0x83d   :  { %476 = vadd.xlane.f32.xlu0 %v475_v48 }
 0x8be   :  { %v589_v7 = vpop.xlane.xlu1 %588 }
 0x8bf   :  { %v590_v49 = vmul.f32 0.03125, %v589_v7 }
 0x8c1   :  { %v591_v51 = vsub.f32 %v582_v41, %v590_v49 }
 0x8c3   :  { %v592_v55 = vsel %vm875_vm6, %v591_v51, 0.0 }
 0x8c4   :  { %v593_v58 = vmul.f32 %v592_v55, %v592_v55 }
 0x8c6   :  { %v477_v50 = vpop.xlane.xlu0 %476  ;;  %v594_v59 = vsel %vm195_vm7, %v593_v58, 0.0 }
 0x8c7   :  { %v478_v52 = vmul.f32 0.03125, %v477_v50 }
 0x8c9   :  { %v479_v53 = vsub.f32 %v470_v45, %v478_v52 }
 0x8cb   :  { %v480_v54 = vsel %vm875_vm6, %v479_v53, 0.0 }
 0x8cc   :  { %v481_v56 = vmul.f32 %v480_v54, %v480_v54 }
 0x8ce   :  { %v482_v57 = vsel %vm195_vm7, %v481_v56, 0.0 }
 0x8cf   :  { %483 = vadd.xlane.f32.xlu0 %v482_v57 }
 0x8d3   :  { %595 = vadd.xlane.f32.xlu0 %v594_v59 }
 0x8e9   :  { %499 = vperm.xlu0 %705, %v496_v60  }
 0x958   :  { %v484_v61 = vpop.xlane.xlu0 %483 }
 0x959   :  { %v485_v62 = vmul.f32 0.03125, %v484_v61 }
 0x95b   :  { %v487_v1 = vadd.f32 1e-05, %v485_v62 }
 0x95c   :  { %v596_v63 = vpop.xlane.xlu0 %595 }
 0x95d   :  { %v597_v0 = vmul.f32 0.03125, %v596_v63 }
 0x95f   :  { %v599_v30 = vadd.f32 1e-05, %v597_v0 }
 0x961   :  { %711 = vrsqrt.f32 %v599_v30 }
 0x962   :  { %713 = vrsqrt.f32 %v487_v1 }
 0x964   :  { %v500_v13 = vpop.permute.xlu0 %499 }
 0x96e   :  { %v712_v3 = vpop.eup %711 }
 0x96f   :  { %v601_v4 = vmul.f32 %v712_v3, %v598_v2  ;;  %v714_v5 = vpop.eup %713 }
 0x970   :  { %v489_v8 = vmul.f32 %v714_v5, %v486_v6 }
 0x971   :  { %604 = vperm.xlu1 %706, %v601_v4  }
 0x975   :  { %492 = vperm.xlu1 %706, %v489_v8  }
 0x979   :  { %611 = vperm.xlu1 %706, %v608_v9  }
 0x9ec   :  { %v605_v10 = vpop.permute.xlu1 %604 }
 0x9ed   :  { %v607_v14 = vmul.f32 %v605_v10, %v591_v51 }
 0x9f0   :  { %v493_v11 = vpop.permute.xlu1 %492 }
 0x9f1   :  { %v495_v12 = vmul.f32 %v493_v11, %v479_v53 }
 0x9f3   :  { %v502_v15 = vadd.f32 %v500_v13, %v495_v12 }
 0x9f4   :  { %v612_v16 = vpop.permute.xlu1 %611 }
 0x9f5   :  { %v503_v17 = vmax.f32 %v502_v15, 0.0  ;;  %v614_v18 = vadd.f32 %v612_v16, %v607_v14 }
 0x9f7   :  { %v615_v19 = vadd.f32 %v614_v18, %v503_v17 }
 0x9f9   :  { %616 = vst.msk [vmem:[#allocation4] sm:$0xff] %vm195_vm7, %v615_v19 }
 0x9fa   :  { %726 = shalt.err (!%p723_p4)
}
 0x9fb   :  { %626 = dma.vmem_to_hbm [thread:$0]  %s624_s15, 128, %s992_s13, [#allocation5]  }
 0x9fc   :  { %735 = dma.done.wait [#allocation5], 128  }
 0x9fd   :  { %736 = vsyncadd [#allocation5], 4294967168 }
 0x9fe   :  { %630 = vsyncpa [#allocation5], 1 }

</bundles_post_ra>
